<compile_context>
chip_gen: v6e
topology: v6e:2x2x1
jax: 0.10.0
libtpu: 0.0.40
codegen_flags: <defaults>
</compile_context>

<pallas_src>
import functools

import jax
import jax.numpy as jnp
from jax.experimental import pallas as pl
from jax.experimental.pallas import tpu as pltpu

HH = 0.1  # residual step size "hh" of the PyTorch module


def _round_up(x, m):
    return ((x + m - 1) // m) * m


def vnet_kernel(tT_ref, xT_ref,
                w1t_ref, w1x_ref, b1_ref,
                w2_ref, b2_ref,
                w3_ref, b3_ref,
                wl_ref, bl_ref,
                o_ref):
    """One batch tile, transposed layout (batch on lanes, features on sublanes).

    tT_ref : (1,  TB)  time            xT_ref : (dim, TB)  spatial input
    w1t    : (ns, 1)   lin1 weights for the t column
    w1x    : (ns, dim) lin1 weights for the x columns
    b*     : (ns, 1)   biases (columns);  wl: (ns, 1);  bl: (1,1) in SMEM
    o_ref  : (1,  TB)  lane-dense per-sample output
    """
    tT = tT_ref[...]                                    # (1, TB)
    xT = xT_ref[...]                                    # (dim, TB)

    # lin1 + act:  h = tanh(W1x @ x^T + w1t * t^T + b1)   -> (ns, TB)
    h = jnp.tanh(
        jnp.dot(w1x_ref[...], xT, preferred_element_type=jnp.float32)
        + w1t_ref[...] * tT
        + b1_ref[...])

    # residual block 2
    h = jnp.tanh(h + HH * (
        jnp.dot(w2_ref[...], h, preferred_element_type=jnp.float32)
        + b2_ref[...]))

    # residual block 3
    h = jnp.tanh(h + HH * (
        jnp.dot(w3_ref[...], h, preferred_element_type=jnp.float32)
        + b3_ref[...]))

    # linlast (output width 1): VPU multiply + sublane reduce, not an MXU pass.
    out = jnp.sum(h * wl_ref[...], axis=0, keepdims=True) + bl_ref[0, 0]  # (1,TB)

    # time-interpolated blend between learned dynamics and terminal condition.
    e = jnp.exp(tT - 1.0)                               # (1, TB)
    psi = 0.5 * jnp.sum(xT * xT, axis=0, keepdims=True)  # psi_func(x) = 0.5||x||^2
    o_ref[...] = (1.0 - e) * out + e * psi


@functools.partial(jax.jit, static_argnames=("block_b",))
def vnet_forward(t, inp, params, *, block_b=1024):
    """t: (B,1), inp: (B,dim) -> (B,1). Matches V_Net.forward."""
    B, dim = inp.shape
    ns = params["w2"].shape[0]

    # Lane-dense layout: batch on the last (lane) axis.
    tT = t.reshape(1, B)   # (B,1)->(1,B) is a free (contiguous) reshape
    xT = inp.T             # (dim,B); store inputs pre-transposed to avoid this copy

    tb = min(block_b, _round_up(B, 128))   # batch tile, multiple of 128
    b_pad = _round_up(B, tb)
    if b_pad != B:                          # pad ragged tail (zeros are benign)
        tT = jnp.pad(tT, ((0, 0), (0, b_pad - B)))
        xT = jnp.pad(xT, ((0, 0), (0, b_pad - B)))

    grid = (b_pad // tb,)
    batch_blk = lambda i: (0, i)   # batch tiles march along the lane axis
    const_blk = lambda i: (0, 0)   # weights/biases stay VMEM-resident

    out = pl.pallas_call(
        vnet_kernel,
        out_shape=jax.ShapeDtypeStruct((1, b_pad), jnp.float32),
        grid=grid,
        in_specs=[
            pl.BlockSpec((1, tb), batch_blk),          # tT
            pl.BlockSpec((dim, tb), batch_blk),        # xT
            pl.BlockSpec((ns, 1), const_blk),          # w1t
            pl.BlockSpec((ns, dim), const_blk),        # w1x
            pl.BlockSpec((ns, 1), const_blk),          # b1
            pl.BlockSpec((ns, ns), const_blk),         # w2
            pl.BlockSpec((ns, 1), const_blk),          # b2
            pl.BlockSpec((ns, ns), const_blk),         # w3
            pl.BlockSpec((ns, 1), const_blk),          # b3
            pl.BlockSpec((ns, 1), const_blk),          # wl
            pl.BlockSpec((1, 1), const_blk,            # bl scalar in SMEM
                         memory_space=pltpu.MemorySpace.SMEM),
        ],
        out_specs=pl.BlockSpec((1, tb), batch_blk),
        compiler_params=pltpu.CompilerParams(
            dimension_semantics=("parallel",)),
    )(tT, xT,
      params["w1t"], params["w1x"], params["b1"],
      params["w2"], params["b2"],
      params["w3"], params["b3"],
      params["wl"], params["bl"])

    return out[0, :B].reshape(B, 1)


def init_params(key, dim, ns):
    """PyTorch nn.Linear-style U(-1/sqrt(fan_in), 1/sqrt(fan_in)) init, stored
    in the transposed (out_features, in_features)-style layout the kernel uses."""
    def uinit(k, shape, fan_in):
        bound = 1.0 / jnp.sqrt(jnp.float32(fan_in))
        return jax.random.uniform(k, shape, jnp.float32, -bound, bound)

    ks = jax.random.split(key, 9)
    fan1 = dim + 1
    return dict(
        w1t=uinit(ks[0], (ns, 1), fan1),
        w1x=uinit(ks[1], (ns, dim), fan1),
        b1=uinit(ks[2], (ns, 1), fan1),
        w2=uinit(ks[3], (ns, ns), ns),
        b2=uinit(ks[4], (ns, 1), ns),
        w3=uinit(ks[5], (ns, ns), ns),
        b3=uinit(ks[6], (ns, 1), ns),
        wl=uinit(ks[7], (ns, 1), ns),
        bl=uinit(ks[8], (1, 1), ns),
    )


def vnet_reference(t, inp, params):
    """Pure-JAX reference in the PyTorch op order (for sanity checking)."""
    hp = jax.lax.Precision.HIGHEST
    W1 = jnp.concatenate([params["w1t"], params["w1x"]], axis=1)  # (ns, dim+1)
    xt = jnp.concatenate([t, inp], axis=1)                        # (B, dim+1)
    h = jnp.tanh(jnp.dot(xt, W1.T, precision=hp) + params["b1"].T)
    h = jnp.tanh(h + HH * (jnp.dot(h, params["w2"].T, precision=hp) + params["b2"].T))
    h = jnp.tanh(h + HH * (jnp.dot(h, params["w3"].T, precision=hp) + params["b3"].T))
    out = jnp.dot(h, params["wl"], precision=hp) + params["bl"][0, 0]
    e = jnp.exp(t - 1.0)
    psi = 0.5 * jnp.sum(inp * inp, axis=1, keepdims=True)
    return (1.0 - e) * out + e * psi


# TODO(synk): act_func / psi_func are abstract callables in the PyTorch module;
# tanh and 0.5*||x||^2 are baked in here. get_grad (autograd) and the unused
# lintt/TT members are not part of the forward pass and are not implemented.

if __name__ == "__main__":
    B, dim, ns = 8, 4, 32
    key = jax.random.PRNGKey(0)
    kt, kx, kp = jax.random.split(key, 3)

    t = jax.random.uniform(kt, (B, 1), jnp.float32)      # time in [0, 1)
    inp = jax.random.normal(kx, (B, dim), jnp.float32)
    params = init_params(kp, dim, ns)

    out = vnet_forward(t, inp, params)
    out = jax.block_until_ready(out)

    ref = vnet_reference(t, inp, params)
    assert out.shape == (B, 1)
    # f32 matmuls may run at slightly different MXU precisions inside Pallas
    # vs. plain XLA, hence the mildly relaxed tolerance.
    assert jnp.allclose(out, ref, atol=5e-3, rtol=5e-3), (
        float(jnp.max(jnp.abs(out - ref))))

    print("KERNEL_OK")
</pallas_src>

<mosaic_0001>
module attributes {stable_mosaic.version = 11 : i64} {
  func.func @vnet_kernel(%arg0: i32, %arg1: memref<1x128xf32, #tpu.memory_space<vmem>>, %arg2: memref<4x128xf32, #tpu.memory_space<vmem>>, %arg3: memref<32x1xf32, #tpu.memory_space<vmem>>, %arg4: memref<32x4xf32, #tpu.memory_space<vmem>>, %arg5: memref<32x1xf32, #tpu.memory_space<vmem>>, %arg6: memref<32x32xf32, #tpu.memory_space<vmem>>, %arg7: memref<32x1xf32, #tpu.memory_space<vmem>>, %arg8: memref<32x32xf32, #tpu.memory_space<vmem>>, %arg9: memref<32x1xf32, #tpu.memory_space<vmem>>, %arg10: memref<32x1xf32, #tpu.memory_space<vmem>>, %arg11: memref<1x1xf32, #tpu.memory_space<smem>>, %arg12: memref<1x128xf32, #tpu.memory_space<vmem>>) attributes {dimension_semantics = [#tpu.dimension_semantics<parallel>], iteration_bounds = array<i64: 1>, scalar_prefetch = 0 : i64, scratch_operands = 0 : i64, tpu.core_type = #tpu.core_type<tc>, window_params = [{transform_indices = @transform_0, window_bounds = array<i64: 1, 128>}, {transform_indices = @transform_1, window_bounds = array<i64: 4, 128>}, {pipeline_mode = #tpu.pipeline_mode<synchronous>, transform_indices = @transform_2, window_bounds = array<i64: 32, 1>}, {pipeline_mode = #tpu.pipeline_mode<synchronous>, transform_indices = @transform_3, window_bounds = array<i64: 32, 4>}, {pipeline_mode = #tpu.pipeline_mode<synchronous>, transform_indices = @transform_4, window_bounds = array<i64: 32, 1>}, {pipeline_mode = #tpu.pipeline_mode<synchronous>, transform_indices = @transform_5, window_bounds = array<i64: 32, 32>}, {pipeline_mode = #tpu.pipeline_mode<synchronous>, transform_indices = @transform_6, window_bounds = array<i64: 32, 1>}, {pipeline_mode = #tpu.pipeline_mode<synchronous>, transform_indices = @transform_7, window_bounds = array<i64: 32, 32>}, {pipeline_mode = #tpu.pipeline_mode<synchronous>, transform_indices = @transform_8, window_bounds = array<i64: 32, 1>}, {pipeline_mode = #tpu.pipeline_mode<synchronous>, transform_indices = @transform_9, window_bounds = array<i64: 32, 1>}, {transform_indices = @transform_10, window_bounds = array<i64: 1, 1>}, {transform_indices = @transform_11, window_bounds = array<i64: 1, 128>}]} {
    %c0 = arith.constant 0 : index
    %c0_0 = arith.constant 0 : index
    %0 = vector.load %arg1[%c0, %c0_0] : memref<1x128xf32, #tpu.memory_space<vmem>>, vector<1x128xf32>
    %c0_1 = arith.constant 0 : index
    %c0_2 = arith.constant 0 : index
    %1 = vector.load %arg2[%c0_1, %c0_2] : memref<4x128xf32, #tpu.memory_space<vmem>>, vector<4x128xf32>
    %c0_3 = arith.constant 0 : index
    %c0_4 = arith.constant 0 : index
    %2 = vector.load %arg4[%c0_3, %c0_4] : memref<32x4xf32, #tpu.memory_space<vmem>>, vector<32x4xf32>
    %cst = arith.constant dense<0.000000e+00> : vector<32x128xf32>
    %3 = tpu.matmul %2, %1, %cst {dimension_numbers = #tpu.dot_dimension_numbers<[1], [0], [0], [1], [0, 0, 1, 1], [], []>} : vector<32x4xf32>, vector<4x128xf32>, vector<32x128xf32> -> vector<32x128xf32>
    %c0_5 = arith.constant 0 : index
    %c0_6 = arith.constant 0 : index
    %4 = vector.load %arg3[%c0_5, %c0_6] : memref<32x1xf32, #tpu.memory_space<vmem>>, vector<32x1xf32>
    %5 = vector.broadcast %4 : vector<32x1xf32> to vector<32x128xf32>
    %6 = vector.broadcast %0 : vector<1x128xf32> to vector<32x128xf32>
    %7 = arith.mulf %5, %6 : vector<32x128xf32>
    %8 = arith.addf %3, %7 : vector<32x128xf32>
    %c0_7 = arith.constant 0 : index
    %c0_8 = arith.constant 0 : index
    %9 = vector.load %arg5[%c0_7, %c0_8] : memref<32x1xf32, #tpu.memory_space<vmem>>, vector<32x1xf32>
    %10 = vector.broadcast %9 : vector<32x1xf32> to vector<32x128xf32>
    %11 = arith.addf %8, %10 : vector<32x128xf32>
    %12 = math.tanh %11 : vector<32x128xf32>
    %c0_9 = arith.constant 0 : index
    %c0_10 = arith.constant 0 : index
    %13 = vector.load %arg6[%c0_9, %c0_10] : memref<32x32xf32, #tpu.memory_space<vmem>>, vector<32x32xf32>
    %cst_11 = arith.constant dense<0.000000e+00> : vector<32x128xf32>
    %14 = tpu.matmul %13, %12, %cst_11 {dimension_numbers = #tpu.dot_dimension_numbers<[1], [0], [0], [1], [0, 0, 1, 1], [], []>} : vector<32x32xf32>, vector<32x128xf32>, vector<32x128xf32> -> vector<32x128xf32>
    %c0_12 = arith.constant 0 : index
    %c0_13 = arith.constant 0 : index
    %15 = vector.load %arg7[%c0_12, %c0_13] : memref<32x1xf32, #tpu.memory_space<vmem>>, vector<32x1xf32>
    %16 = vector.broadcast %15 : vector<32x1xf32> to vector<32x128xf32>
    %17 = arith.addf %14, %16 : vector<32x128xf32>
    %cst_14 = arith.constant 1.000000e-01 : f32
    %18 = vector.broadcast %cst_14 : f32 to vector<32x128xf32>
    %19 = arith.mulf %18, %17 : vector<32x128xf32>
    %20 = arith.addf %12, %19 : vector<32x128xf32>
    %21 = math.tanh %20 : vector<32x128xf32>
    %c0_15 = arith.constant 0 : index
    %c0_16 = arith.constant 0 : index
    %22 = vector.load %arg8[%c0_15, %c0_16] : memref<32x32xf32, #tpu.memory_space<vmem>>, vector<32x32xf32>
    %cst_17 = arith.constant dense<0.000000e+00> : vector<32x128xf32>
    %23 = tpu.matmul %22, %21, %cst_17 {dimension_numbers = #tpu.dot_dimension_numbers<[1], [0], [0], [1], [0, 0, 1, 1], [], []>} : vector<32x32xf32>, vector<32x128xf32>, vector<32x128xf32> -> vector<32x128xf32>
    %c0_18 = arith.constant 0 : index
    %c0_19 = arith.constant 0 : index
    %24 = vector.load %arg9[%c0_18, %c0_19] : memref<32x1xf32, #tpu.memory_space<vmem>>, vector<32x1xf32>
    %25 = vector.broadcast %24 : vector<32x1xf32> to vector<32x128xf32>
    %26 = arith.addf %23, %25 : vector<32x128xf32>
    %cst_20 = arith.constant 1.000000e-01 : f32
    %27 = vector.broadcast %cst_20 : f32 to vector<32x128xf32>
    %28 = arith.mulf %27, %26 : vector<32x128xf32>
    %29 = arith.addf %21, %28 : vector<32x128xf32>
    %30 = math.tanh %29 : vector<32x128xf32>
    %c0_21 = arith.constant 0 : index
    %c0_22 = arith.constant 0 : index
    %31 = vector.load %arg10[%c0_21, %c0_22] : memref<32x1xf32, #tpu.memory_space<vmem>>, vector<32x1xf32>
    %32 = vector.broadcast %31 : vector<32x1xf32> to vector<32x128xf32>
    %33 = arith.mulf %30, %32 : vector<32x128xf32>
    %cst_23 = arith.constant dense<0.000000e+00> : vector<128xf32>
    %34 = vector.multi_reduction <add>, %33, %cst_23 [0] : vector<32x128xf32> to vector<128xf32>
    %35 = vector.shape_cast %34 : vector<128xf32> to vector<1x128xf32>
    %c0_24 = arith.constant 0 : index
    %c0_25 = arith.constant 0 : index
    %36 = memref.load %arg11[%c0_24, %c0_25] : memref<1x1xf32, #tpu.memory_space<smem>>
    %37 = vector.broadcast %36 : f32 to vector<1x128xf32>
    %38 = arith.addf %35, %37 : vector<1x128xf32>
    %cst_26 = arith.constant 1.000000e+00 : f32
    %39 = vector.broadcast %cst_26 : f32 to vector<1x128xf32>
    %40 = arith.subf %0, %39 : vector<1x128xf32>
    %41 = math.exp %40 : vector<1x128xf32>
    %42 = arith.mulf %1, %1 : vector<4x128xf32>
    %cst_27 = arith.constant dense<0.000000e+00> : vector<128xf32>
    %43 = vector.multi_reduction <add>, %42, %cst_27 [0] : vector<4x128xf32> to vector<128xf32>
    %44 = vector.shape_cast %43 : vector<128xf32> to vector<1x128xf32>
    %cst_28 = arith.constant 5.000000e-01 : f32
    %45 = vector.broadcast %cst_28 : f32 to vector<1x128xf32>
    %46 = arith.mulf %45, %44 : vector<1x128xf32>
    %cst_29 = arith.constant 1.000000e+00 : f32
    %47 = vector.broadcast %cst_29 : f32 to vector<1x128xf32>
    %48 = arith.subf %47, %41 : vector<1x128xf32>
    %49 = arith.mulf %48, %38 : vector<1x128xf32>
    %50 = arith.mulf %41, %46 : vector<1x128xf32>
    %51 = arith.addf %49, %50 : vector<1x128xf32>
    %c0_30 = arith.constant 0 : index
    %c0_31 = arith.constant 0 : index
    %52 = vector.load %arg12[%c0_30, %c0_31] : memref<1x128xf32, #tpu.memory_space<vmem>>, vector<1x128xf32>
    tpu.vector_store %arg12[%c0_30, %c0_31], %51 {strides = array<i32>} : memref<1x128xf32, #tpu.memory_space<vmem>>, vector<1x128xf32>,
    return
  }
  func.func @transform_0(%arg0: i32) -> (i32, i32) {
    %c0_i32 = arith.constant 0 : i32
    %c0_i32_0 = arith.constant 0 : i32
    return %c0_i32, %arg0 : i32, i32
  }
  func.func @transform_1(%arg0: i32) -> (i32, i32) {
    %c0_i32 = arith.constant 0 : i32
    %c0_i32_0 = arith.constant 0 : i32
    return %c0_i32, %arg0 : i32, i32
  }
  func.func @transform_2(%arg0: i32) -> (i32, i32) {
    %c0_i32 = arith.constant 0 : i32
    %c0_i32_0 = arith.constant 0 : i32
    %c0_i32_1 = arith.constant 0 : i32
    return %c0_i32, %c0_i32_0 : i32, i32
  }
  func.func @transform_3(%arg0: i32) -> (i32, i32) {
    %c0_i32 = arith.constant 0 : i32
    %c0_i32_0 = arith.constant 0 : i32
    %c0_i32_1 = arith.constant 0 : i32
    return %c0_i32, %c0_i32_0 : i32, i32
  }
  func.func @transform_4(%arg0: i32) -> (i32, i32) {
    %c0_i32 = arith.constant 0 : i32
    %c0_i32_0 = arith.constant 0 : i32
    %c0_i32_1 = arith.constant 0 : i32
    return %c0_i32, %c0_i32_0 : i32, i32
  }
  func.func @transform_5(%arg0: i32) -> (i32, i32) {
    %c0_i32 = arith.constant 0 : i32
    %c0_i32_0 = arith.constant 0 : i32
    %c0_i32_1 = arith.constant 0 : i32
    return %c0_i32, %c0_i32_0 : i32, i32
  }
  func.func @transform_6(%arg0: i32) -> (i32, i32) {
    %c0_i32 = arith.constant 0 : i32
    %c0_i32_0 = arith.constant 0 : i32
    %c0_i32_1 = arith.constant 0 : i32
    return %c0_i32, %c0_i32_0 : i32, i32
  }
  func.func @transform_7(%arg0: i32) -> (i32, i32) {
    %c0_i32 = arith.constant 0 : i32
    %c0_i32_0 = arith.constant 0 : i32
    %c0_i32_1 = arith.constant 0 : i32
    return %c0_i32, %c0_i32_0 : i32, i32
  }
  func.func @transform_8(%arg0: i32) -> (i32, i32) {
    %c0_i32 = arith.constant 0 : i32
    %c0_i32_0 = arith.constant 0 : i32
    %c0_i32_1 = arith.constant 0 : i32
    return %c0_i32, %c0_i32_0 : i32, i32
  }
  func.func @transform_9(%arg0: i32) -> (i32, i32) {
    %c0_i32 = arith.constant 0 : i32
    %c0_i32_0 = arith.constant 0 : i32
    %c0_i32_1 = arith.constant 0 : i32
    return %c0_i32, %c0_i32_0 : i32, i32
  }
  func.func @transform_10(%arg0: i32) -> (i32, i32) {
    %c0_i32 = arith.constant 0 : i32
    %c0_i32_0 = arith.constant 0 : i32
    %c0_i32_1 = arith.constant 0 : i32
    return %c0_i32, %c0_i32_0 : i32, i32
  }
  func.func @transform_11(%arg0: i32) -> (i32, i32) {
    %c0_i32 = arith.constant 0 : i32
    %c0_i32_0 = arith.constant 0 : i32
    return %c0_i32, %arg0 : i32, i32
  }
}

</mosaic_0001>

<bundles_post_ra>
// kernel: vnet_forward.1
= control target key start
LH: loop header
LB: loop body
LE: loop exit
PB: predicated region body
PF: predicated region fallthrough
CT: control target
= control target key end

     0   :  { %vm92_vm0 = vcmask 1043456   ;;  %vm79_vm1 = vcmask 31744   ;;  %v649_v3 = vmov 0   ;;  %vm241_vm2 = vcmask 261120   ;;  %s840_s1 = inlined_call_operand.vmem [shape: f32[4,128], index: 1, kind: input, shape index: {}]   ;;  %s841_s3 = inlined_call_operand.vmem [shape: f32[32,4], index: 3, kind: input, shape index: {}]   ;;  %s842_s2 = inlined_call_operand.vmem [shape: f32[32,1], index: 2, kind: input, shape index: {}]   ;;  %s843_s4 = inlined_call_operand.vmem [shape: f32[32,1], index: 4, kind: input, shape index: {}]   ;;  %s844_s0 = inlined_call_operand.vmem [shape: f32[1,128], index: 0, kind: input, shape index: {}]   ;;  %s845_s6 = inlined_call_operand.vmem [shape: f32[32,1], index: 6, kind: input, shape index: {}]   ;;  %s846_s8 = inlined_call_operand.vmem [shape: f32[32,1], index: 8, kind: input, shape index: {}]   ;;  %s847_s9 = inlined_call_operand.vmem [shape: f32[32,1], index: 9, kind: input, shape index: {}]   ;;  %s848_s5 = inlined_call_operand.vmem [shape: f32[32,32], index: 5, kind: input, shape index: {}]   ;;  %s849_s7 = inlined_call_operand.vmem [shape: f32[32,32], index: 7, kind: input, shape index: {}]   ;;  %s850_s10 = inlined_call_operand.<no memory space> [shape: f32[1,1], index: 10, kind: input, shape index: {}]   ;;  %s851_s11 = inlined_call_operand.vmem [shape: f32[1,128], index: 11, kind: output, shape index: {}]  }
   0x1   :  { %v40_v0 = vld [vmem:[%s840_s1] sm:$0xf]  ;;  %v42_v2 = vld [vmem:[%s841_s3 + $0x8] sm:$0xff]  ;;  %621 = vset.pattern.permute.xlu0 %v649_v3  ;;  %622 = vset.pattern.permute.xlu1 %v649_v3  ;;  %v43_v5 = vld [vmem:[%s841_s3 + $0x10] sm:$0xff]  ;;  %v70_v41 = vlaneseq }
   0x2   :  { %v41_v1 = vld [vmem:[%s841_s3] sm:$0xff]  ;;  %584 = vmatprep.subr.msk.mxu0 %vm92_vm0, %v40_v0  ;;  %v531_v4 = vmul.f32 %v40_v0, %v40_v0  ;;  %v48_v6 = vld [vmem:[%s842_s2 + $0x18] sm:$0xff]  ;;  %v46_v7 = vld [vmem:[%s842_s2 + $0x8] sm:$0xff] }
   0x3   :  { %586 = vmatprep.mubr.msk.f32.mxu0 %vm79_vm1, %v41_v1  ;;  %585 = vmatpush3.msk.msra.mxu0 %vm92_vm0, %v40_v0  ;;  %v47_v9 = vld [vmem:[%s842_s2 + $0x10] sm:$0xff]  ;;  %v44_v11 = vld [vmem:[%s841_s3 + $0x18] sm:$0xff]  ;;  %v45_v14 = vld [vmem:[%s842_s2] sm:$0xff]  ;;  %v71_v42 = vshrl.u32 %v70_v41, 7 }
   0x4   :  { %66 = vperm.xlu0 %621, %v48_v6   ;;  %v532_v8 = vsel %vm92_vm0, %v531_v4, 0.0  ;;  %587 = vmatmul.mubr.msk.f32.vlgmr.msra.gmra.mxu0 %vm79_vm1, %v42_v2  ;;  %v184_v12 = vld [vmem:[%s843_s4 + $0x18] sm:$0xff]  ;;  %v183_v16 = vld [vmem:[%s843_s4 + $0x10] sm:$0xff]  ;;  %v39_v17 = vld [vmem:[%s844_s0] sm:$0x1] }
   0x5   :  { %56 = vperm.xlu1 %622, %v46_v7   ;;  %v533_v10 = vrot.slane %v532_v8, 4  ;;  %589 = vmatprep.mubr.msk.f32.mxu0 %vm79_vm1, %v43_v5  ;;  %v562_v18 = vadd.f32 -1.0, %v39_v17  ;;  %v182_v20 = vld [vmem:[%s843_s4 + $0x8] sm:$0xff]  ;;  %v181_v22 = vld [vmem:[%s843_s4] sm:$0xff]  ;;  %v220_v24 = vld [vmem:[%s845_s6 + $0x18] sm:$0xff]  ;;  %v72_v45 = vsub.s32 0, %v71_v42 }
   0x6   :  { %v219_v25 = vld [vmem:[%s845_s6 + $0x10] sm:$0xff]  ;;  %v218_v27 = vld [vmem:[%s845_s6 + $0x8] sm:$0xff]  ;;  %v217_v28 = vld [vmem:[%s845_s6] sm:$0xff] }
   0x7   :  { %v534_v13 = vadd.f32 %v533_v10, %v532_v8  ;;  %v529_v21 = vmul.f32 1.442695, %v562_v18  ;;  %v355_v30 = vld [vmem:[%s846_s8] sm:$0xff]  ;;  %v356_v31 = vld [vmem:[%s846_s8 + $0x8] sm:$0xff]  ;;  %v357_v33 = vld [vmem:[%s846_s8 + $0x10] sm:$0xff]  ;;  %v73_v47 = vrot.slane %v39_v17, %v72_v45 }
   0x8   :  { %61 = vperm.xlu0 %621, %v47_v9   ;;  %590 = vmatmul.mubr.msk.f32.gmra.mxu0 %vm79_vm1, %v44_v11  ;;  %v358_v35 = vld [vmem:[%s846_s8 + $0x18] sm:$0xff]  ;;  %v488_v36 = vld [vmem:[%s847_s9] sm:$0xff]  ;;  %v489_v37 = vld [vmem:[%s847_s9 + $0x8] sm:$0xff] }
   0x9   :  { %202 = vperm.xlu1 %622, %v184_v12   ;;  %v535_v15 = vrot.slane %v534_v13, 2  ;;  %623 = vpow2.f32 %v529_v21  ;;  %v490_v38 = vld [vmem:[%s847_s9 + $0x10] sm:$0xff]  ;;  %v491_v39 = vld [vmem:[%s847_s9 + $0x18] sm:$0xff]  ;;  %v213_v40 = vld [vmem:[%s848_s5] sm:$0xff] }
   0xa   :  { %600 = vmatprep.mubr.msk.f32.mxu1 %vm241_vm2, %v213_v40  ;;  %v214_v9 = vld [vmem:[%s848_s5 + $0x8] sm:$0xff]  ;;  %v215_v10 = vld [vmem:[%s848_s5 + $0x10] sm:$0xff]  ;;  %v216_v11 = vld [vmem:[%s848_s5 + $0x18] sm:$0xff] }
   0xb   :  { %v536_v19 = vadd.f32 %v535_v15, %v534_v13  ;;  %v351_v12 = vld [vmem:[%s849_s7] sm:$0xff]  ;;  %v353_v40 = vld [vmem:[%s849_s7 + $0x10] sm:$0xff]  ;;  %v354_v41 = vld [vmem:[%s849_s7 + $0x18] sm:$0xff] }
   0xc   :  { %51 = vperm.xlu0 %621, %v45_v14   ;;  %614 = vmatprep.mubr.msk.f32.mxu0 %vm241_vm2, %v351_v12 }
   0xd   :  { %197 = vperm.xlu1 %622, %v183_v16   ;;  %v537_v23 = vrot.slane %v536_v19, 1 }
   0xf   :  { %v538_v26 = vadd.f32 %v537_v23, %v536_v19 }
  0x10   :  { %192 = vperm.xlu0 %621, %v182_v20  }
  0x11   :  { %187 = vperm.xlu1 %622, %v181_v22   ;;  %v539_v29 = vmul.f32 0.5, %v538_v26 }
  0x14   :  { %238 = vperm.xlu0 %621, %v220_v24  }
  0x15   :  { %233 = vperm.xlu1 %622, %v219_v25  }
  0x16   :  { %v777_v32 = vpop.eup %623 }
  0x17   :  { %v783_v34 = vmul.f32 %v777_v32, %v539_v29 }
  0x18   :  { %228 = vperm.xlu0 %621, %v218_v27  }
  0x19   :  { %223 = vperm.xlu1 %622, %v217_v28  }
  0x1c   :  { %361 = vperm.xlu0 %621, %v355_v30  }
  0x1d   :  { %366 = vperm.xlu1 %622, %v356_v31  }
  0x20   :  { %371 = vperm.xlu0 %621, %v357_v33  }
  0x21   :  { %376 = vperm.xlu1 %622, %v358_v35  }
  0x24   :  { %494 = vperm.xlu0 %621, %v488_v36  }
  0x25   :  { %499 = vperm.xlu1 %622, %v489_v37  }
  0x28   :  { %504 = vperm.xlu0 %621, %v490_v38  }
  0x29   :  { %509 = vperm.xlu1 %622, %v491_v39   ;;  %v352_v39 = vld [vmem:[%s849_s7 + $0x8] sm:$0xff] }
  0x7f   :  { %v67_v43 = vpop.permute.xlu0 %66 }
  0x80   :  { %v57_v44 = vpop.permute.xlu1 %56  ;;  %v78_v53 = vmul.f32 %v73_v47, %v67_v43 }
  0x81   :  { %v76_v50 = vmul.f32 %v73_v47, %v57_v44 }
  0x83   :  { %v62_v46 = vpop.permute.xlu0 %61 }
  0x84   :  { %v203_v48 = vpop.permute.xlu1 %202  ;;  %v77_v56 = vmul.f32 %v73_v47, %v62_v46 }
  0x87   :  { %v52_v51 = vpop.permute.xlu0 %51 }
  0x88   :  { %v198_v54 = vpop.permute.xlu1 %197  ;;  %v75_v57 = vmul.f32 %v73_v47, %v52_v51 }
  0x8b   :  { %v193_v0 = vpop.permute.xlu0 %192 }
  0x8c   :  { %v188_v3 = vpop.permute.xlu1 %187 }
  0x8f   :  { %v239_v13 = vpop.permute.xlu0 %238 }
  0x90   :  { %v234_v14 = vpop.permute.xlu1 %233 }
  0x93   :  { %v229_v16 = vpop.permute.xlu0 %228 }
  0x94   :  { %v224_v19 = vpop.permute.xlu1 %223 }
  0x97   :  { %v362_v43 = vpop.permute.xlu0 %361 }
  0x98   :  { %v367_v42 = vpop.permute.xlu1 %366 }
  0xc4   :  { %v588_v49 = vpop.f32.mrf.mxu0 }
  0xc5   :  { %v168_v58 = vadd.f32 %v588_v49, %v76_v50  ;;  %v377_v49 = vpop.permute.xlu1 %376 }
  0xc6   :  { %v162_v52 = vpop.f32.mrf.mxu0 }
  0xc7   :  { %v163_v61 = vadd.f32 %v162_v52, %v75_v57  ;;  %v206_v1 = vadd.f32 %v193_v0, %v168_v58 }
  0xc8   :  { %v591_v55 = vpop.f32.mrf.mxu0 }
  0xc9   :  { %v178_v59 = vadd.f32 %v591_v55, %v78_v53  ;;  %v205_v4 = vadd.f32 %v188_v3, %v163_v61 }
  0xca   :  { %v172_v60 = vpop.f32.mrf.mxu0 }
  0xcb   :  { %v208_v62 = vadd.f32 %v203_v48, %v178_v59  ;;  %v173_v63 = vadd.f32 %v172_v60, %v77_v56 }
  0xcd   :  { %625 = vtanh.f32 %v208_v62  ;;  %v207_v2 = vadd.f32 %v198_v54, %v173_v63  ;;  %v372_v54 = vpop.permute.xlu0 %371 }
  0xcf   :  { %627 = vtanh.f32 %v207_v2 }
  0xd0   :  { %629 = vtanh.f32 %v206_v1  ;;  %v500_v1 = vpop.permute.xlu1 %499 }
  0xd1   :  { %631 = vtanh.f32 %v205_v4  ;;  %v495_v62 = vpop.permute.xlu0 %494 }
  0xda   :  { %v626_v5 = vpop.eup %625 }
  0xdb   :  { %592 = vmatprep.subr.mxu1 %v626_v5 }
  0xdc   :  { %v628_v6 = vpop.eup %627  ;;  %593 = vmatpush3.msra.mxu1 %v626_v5 }
  0xdd   :  { %594 = vmatprep.subr.mxu1 %v628_v6  ;;  %v630_v7 = vpop.eup %629 }
  0xde   :  { %595 = vmatpush3.msra.mxu1 %v628_v6  ;;  %v632_v8 = vpop.eup %631 }
  0xdf   :  { %596 = vmatprep.subr.mxu1 %v630_v7 }
  0xe0   :  { %597 = vmatpush3.msra.mxu1 %v630_v7 }
  0xe1   :  { %598 = vmatprep.subr.mxu1 %v632_v8 }
  0xe2   :  { %599 = vmatpush3.msra.mxu1 %v632_v8 }
  0xe3   :  { %601 = vmatmul.mubr.msk.f32.vlgmr.msra.gmra.mxu1 %vm241_vm2, %v214_v9  ;;  %v510_v9 = vpop.permute.xlu1 %509 }
  0xe4   :  { %603 = vmatprep.mubr.msk.f32.mxu1 %vm241_vm2, %v215_v10 }
  0xe7   :  { %604 = vmatmul.mubr.msk.f32.gmra.mxu1 %vm241_vm2, %v216_v11 }
 0x1a3   :  { %v602_v15 = vpop.f32.mrf.mxu1 }
 0x1a4   :  { %v326_v18 = vadd.f32 %v602_v15, %v229_v16 }
 0x1a5   :  { %v320_v17 = vpop.f32.mrf.mxu1 }
 0x1a6   :  { %v321_v21 = vadd.f32 %v320_v17, %v224_v19  ;;  %v340_v24 = vmul.f32 0.1, %v326_v18  ;;  %v526_v18 = vstv %s850_s10  ;;  %v540_v19 = vsub.f32 1.0, %v777_v32 }
 0x1a7   :  { %v605_v20 = vpop.f32.mrf.mxu1 }
 0x1a8   :  { %v336_v22 = vadd.f32 %v605_v20, %v239_v13  ;;  %v339_v27 = vmul.f32 0.1, %v321_v21  ;;  %v344_v30 = vadd.f32 %v630_v7, %v340_v24 }
 0x1a9   :  { %v330_v23 = vpop.f32.mrf.mxu1 }
 0x1aa   :  { %v342_v25 = vmul.f32 0.1, %v336_v22  ;;  %v331_v26 = vadd.f32 %v330_v23, %v234_v14  ;;  %v343_v33 = vadd.f32 %v632_v8, %v339_v27 }
 0x1ac   :  { %v346_v28 = vadd.f32 %v626_v5, %v342_v25  ;;  %v341_v29 = vmul.f32 0.1, %v331_v26 }
 0x1ae   :  { %633 = vtanh.f32 %v346_v28  ;;  %v345_v31 = vadd.f32 %v628_v6, %v341_v29  ;;  %v505_v6 = vpop.permute.xlu0 %504 }
 0x1b0   :  { %635 = vtanh.f32 %v345_v31 }
 0x1b1   :  { %637 = vtanh.f32 %v344_v30 }
 0x1b2   :  { %639 = vtanh.f32 %v343_v33 }
 0x1bb   :  { %v634_v35 = vpop.eup %633 }
 0x1bc   :  { %606 = vmatprep.subr.mxu0 %v634_v35 }
 0x1bd   :  { %v636_v36 = vpop.eup %635  ;;  %607 = vmatpush3.msra.mxu0 %v634_v35 }
 0x1be   :  { %608 = vmatprep.subr.mxu0 %v636_v36  ;;  %v638_v37 = vpop.eup %637 }
 0x1bf   :  { %609 = vmatpush3.msra.mxu0 %v636_v36  ;;  %v640_v38 = vpop.eup %639 }
 0x1c0   :  { %610 = vmatprep.subr.mxu0 %v638_v37 }
 0x1c1   :  { %611 = vmatpush3.msra.mxu0 %v638_v37 }
 0x1c2   :  { %612 = vmatprep.subr.mxu0 %v640_v38 }
 0x1c3   :  { %613 = vmatpush3.msra.mxu0 %v640_v38 }
 0x1c4   :  { %615 = vmatmul.mubr.msk.f32.vlgmr.msra.gmra.mxu0 %vm241_vm2, %v352_v39 }
 0x1c5   :  { %617 = vmatprep.mubr.msk.f32.mxu0 %vm241_vm2, %v353_v40 }
 0x1c8   :  { %618 = vmatmul.mubr.msk.f32.gmra.mxu0 %vm241_vm2, %v354_v41 }
 0x284   :  { %v616_v44 = vpop.f32.mrf.mxu0 }
 0x285   :  { %v463_v45 = vadd.f32 %v616_v44, %v367_v42 }
 0x286   :  { %v457_v46 = vpop.f32.mrf.mxu0 }
 0x287   :  { %v477_v47 = vmul.f32 0.1, %v463_v45  ;;  %v458_v48 = vadd.f32 %v457_v46, %v362_v43 }
 0x288   :  { %v619_v50 = vpop.f32.mrf.mxu0 }
 0x289   :  { %v481_v51 = vadd.f32 %v638_v37, %v477_v47  ;;  %v476_v52 = vmul.f32 0.1, %v458_v48  ;;  %v473_v53 = vadd.f32 %v619_v50, %v377_v49 }
 0x28a   :  { %v467_v55 = vpop.f32.mrf.mxu0 }
 0x28b   :  { %v480_v56 = vadd.f32 %v640_v38, %v476_v52  ;;  %v479_v57 = vmul.f32 0.1, %v473_v53  ;;  %v468_v58 = vadd.f32 %v467_v55, %v372_v54  ;;  %641 = vtanh.f32 %v481_v51 }
 0x28d   :  { %643 = vtanh.f32 %v480_v56  ;;  %v483_v59 = vadd.f32 %v634_v35, %v479_v57  ;;  %v478_v60 = vmul.f32 0.1, %v468_v58 }
 0x28f   :  { %v482_v61 = vadd.f32 %v636_v36, %v478_v60  ;;  %645 = vtanh.f32 %v483_v59 }
 0x291   :  { %647 = vtanh.f32 %v482_v61 }
 0x298   :  { %v642_v63 = vpop.eup %641 }
 0x299   :  { %v513_v4 = vmul.f32 %v642_v63, %v500_v1 }
 0x29a   :  { %v644_v0 = vpop.eup %643 }
 0x29b   :  { %v512_v2 = vmul.f32 %v644_v0, %v495_v62 }
 0x29c   :  { %v646_v3 = vpop.eup %645 }
 0x29d   :  { %v516_v7 = vadd.f32 %v513_v4, %v512_v2  ;;  %v515_v10 = vmul.f32 %v646_v3, %v510_v9 }
 0x29e   :  { %v648_v5 = vpop.eup %647 }
 0x29f   :  { %v514_v8 = vmul.f32 %v648_v5, %v505_v6 }
 0x2a1   :  { %v517_v11 = vadd.f32 %v516_v7, %v514_v8 }
 0x2a3   :  { %v518_v12 = vadd.f32 %v517_v11, %v515_v10 }
 0x2a5   :  { %v519_v13 = vrot.slane %v518_v12, 4 }
 0x2a7   :  { %v520_v14 = vadd.f32 %v519_v13, %v518_v12 }
 0x2a9   :  { %v521_v15 = vrot.slane %v520_v14, 2 }
 0x2ab   :  { %v522_v16 = vadd.f32 %v521_v15, %v520_v14 }
 0x2ad   :  { %v523_v17 = vrot.slane %v522_v16, 1 }
 0x2af   :  { %v524_v20 = vadd.f32 %v523_v17, %v522_v16 }
 0x2b1   :  { %v527_v21 = vadd.f32 %v526_v18, %v524_v20 }
 0x2b3   :  { %v541_v22 = vmul.f32 %v540_v19, %v527_v21 }
 0x2b5   :  { %v543_v23 = vadd.f32 %v783_v34, %v541_v22 }
 0x2b7   :  { %544 = vst [vmem:[%s851_s11] sm:$0x1] %v543_v23 }

</bundles_post_ra>
